<compile_context>
chip_gen: v5e
topology: v5e:2x2
jax: 0.10.0
libtpu: 0.0.40
codegen_flags: <defaults>
</compile_context>

<pallas_src>
import functools

import jax
import jax.numpy as jnp
from jax import lax
from jax.experimental import pallas as pl
from jax.experimental.pallas import tpu as pltpu

_LANE = 128


def _pick_tile(total: int, preferred: int, mult: int = 8) -> int:
    """Largest tile <= preferred that divides `total` and is a multiple of
    `mult`.  Falls back to `total` (block dim == array dim is always legal)."""
    t = min(preferred, total)
    t -= t % mult
    while t >= mult:
        if total % t == 0:
            return t
        t -= mult
    return total


def _vmem_capacity_bytes() -> int:
    """Physical VMEM per core; conservative 64 MiB (v7x) if query fails."""
    try:
        cap = getattr(pltpu.get_tpu_info(), "vmem_capacity_bytes", None)
        if cap:
            return int(cap)
    except Exception:
        pass
    return 64 * 1024 * 1024


def _bf16_eup_ok() -> bool:
    """True on generations whose EUP runs bf16 transcendentals (v6e / v7x)."""
    try:
        kind = jax.devices()[0].device_kind.lower()
    except Exception:
        return False
    return any(tag in kind for tag in ("v6", "v7", "tpu7", "7x"))


def _prep_kernel(zi_ref, zj_ref, zn_ref, pos_ref):
    """Fused cat + L2-normalize + cast + per-row positive-pair cosine."""
    zi = zi_ref[...].astype(jnp.float32)                          # (tb, Dp)
    zj = zj_ref[...].astype(jnp.float32)

    # rsqrt runs on the EUP (otherwise idle slot).  torch clamps ||a||*||b||
    # at 1e-8; clamping each squared norm at 1e-12 is equivalent for
    # non-degenerate embeddings.
    zi_n = zi * lax.rsqrt(jnp.maximum(jnp.sum(zi * zi, -1, keepdims=True), 1e-12))
    zj_n = zj * lax.rsqrt(jnp.maximum(jnp.sum(zj * zj, -1, keepdims=True), 1e-12))

    zi_c = zi_n.astype(zn_ref.dtype)
    zj_c = zj_n.astype(zn_ref.dtype)
    zn_ref[0] = zi_c                                              # first half
    zn_ref[1] = zj_c                                              # second half

    # labels (i+B)%N pair row r of z_i with row r of z_j (and vice versa), so
    # each positive pair contributes its cosine twice.  Emit the per-row
    # cosine computed from the *cast* operands (numerator/denominator
    # self-consistency); no serialized accumulator -> prep axis stays parallel.
    pos_ref[...] = jnp.sum(zi_c.astype(jnp.float32) * zj_c.astype(jnp.float32),
                           axis=-1, keepdims=True)


def _lse_kernel(zr_ref, zc_ref, lse_ref, l_sc, *, inv_temp: float, gw: int,
                groups: int, use_bf16_exp: bool):
    """Tiled logits + fixed-shift sum-of-exp over column tiles (last axis).

    Rows are unit-norm, so every logit <= ~1/T; the static shift m = 1/T
    replaces the flash-style running max (no m scratch, no per-tile XLU max,
    no rescale).  The cross-lane sum is deferred to the finalize: per column
    tile we only do elementwise VPU adds into a (tr, gw) accumulator."""
    j = pl.program_id(1)

    @pl.when(j == 0)
    def _():
        l_sc[...] = jnp.zeros(l_sc.shape, l_sc.dtype)

    # A @ B^T on the MXU without materializing a transpose: contract last dims.
    s = lax.dot_general(zr_ref[...], zc_ref[...], (((1,), (1,)), ((), ())),
                        preferred_element_type=jnp.float32)       # (tr, tc) f32
    x = (s - 1.0) * inv_temp          # = logits - 1/T  (<= ~0, never overflows)
    if use_bf16_exp:
        e = jnp.exp(x.astype(jnp.bfloat16))   # bf16 EUP ~2x rate on v6e/v7x
    else:
        e = jnp.exp(x)

    acc = l_sc[...]
    for g in range(groups):           # static unroll: plain VPU adds, no XLU
        acc = acc + e[:, g * gw:(g + 1) * gw].astype(jnp.float32)
    l_sc[...] = acc

    @pl.when(j == pl.num_programs(1) - 1)
    def _():
        # Single cross-lane reduce + log per row tile.  The (n,1) output is a
        # masked store but only O(N) bytes total, written once per row tile.
        lse_ref[...] = inv_temp + jnp.log(
            jnp.sum(l_sc[...], axis=-1, keepdims=True))


def ntxent_loss(z_i, z_j, temperature: float, *, use_bf16_matmul: bool = True,
                row_tile: int = 512, col_tile: int = 2048):
    b, d = z_i.shape
    n = 2 * b
    inv_temp = 1.0 / float(temperature)

    # Lane-dense feature dim: zero-pad to a multiple of 128 (zeros change
    # neither dots nor norms; no-op when D is already lane-aligned).
    dp = -(-d // _LANE) * _LANE
    if dp != d:
        z_i = jnp.pad(z_i, ((0, 0), (0, dp - d)))
        z_j = jnp.pad(z_j, ((0, 0), (0, dp - d)))

    # bf16 operands keep the MXU at full rate; accumulation and softmax math
    # stay in f32.
    zn_dtype = jnp.bfloat16 if use_bf16_matmul else jnp.float32
    elt = 2 if use_bf16_matmul else 4

    # Generation-conditional VMEM budgeting (v5e/v6e: 128 MiB, v7x: 64 MiB).
    vmem_cap = _vmem_capacity_bytes()
    vmem_limit = int(0.8 * vmem_cap)
    budget = int(0.75 * vmem_cap)
    newer_eup = _bf16_eup_ok()
    use_bf16_exp = bool(use_bf16_matmul and newer_eup)
    cparams = dict(vmem_limit_bytes=vmem_limit)

    # ---- prep: normalize + cast + per-row positive cosine (one pass) -------
    row_mult = 16 if use_bf16_matmul else 8      # bf16 packs 2 rows / sublane
    tb = _pick_tile(b, row_tile, row_mult)
    zn, pos = pl.pallas_call(
        _prep_kernel,
        out_shape=(jax.ShapeDtypeStruct((2, b, dp), zn_dtype),
                   jax.ShapeDtypeStruct((b, 1), jnp.float32)),
        grid_spec=pltpu.PrefetchScalarGridSpec(
            num_scalar_prefetch=0,
            grid=(b // tb,),
            in_specs=[pl.BlockSpec((tb, dp), lambda g: (g, 0)),
                      pl.BlockSpec((tb, dp), lambda g: (g, 0))],
            out_specs=(pl.BlockSpec((2, tb, dp), lambda g: (0, g, 0)),
                       pl.BlockSpec((tb, 1), lambda g: (g, 0))),
        ),
        compiler_params=pltpu.CompilerParams(
            dimension_semantics=("parallel",), **cparams),
    )(z_i, z_j)

    zflat = zn.reshape(n, dp)      # contiguous [z_i_norm; z_j_norm], free

    # ---- main: tiled similarity + fixed-shift LSE ---------------------------
    tr = _pick_tile(n, row_tile, row_mult)
    col_mult = 128 if n % 128 == 0 else row_mult
    # v5e (single vector-store slot, no bf16 EUP): cap the column tile.
    col_pref_max = col_tile if newer_eup else min(col_tile, 1024)
    tc = None
    for pref in (col_pref_max, 2048, 1024, 512, 256, 128):
        if pref > col_pref_max:
            continue
        cand = _pick_tile(n, pref, col_mult)
        foot = (2 * (tr + cand) * dp * elt        # double-buffered operands
                + 2 * tr * cand * 4               # logits + exp temporaries
                + tr * _LANE * 4 + 2 * tr * 4)    # lane accumulator + lse block
        if foot <= budget:
            tc = cand
            break
    if tc is None:
        tc = _pick_tile(n, 128, col_mult)
    gw = 128 if tc % 128 == 0 else tc             # lane-group width
    groups = tc // gw

    lse = pl.pallas_call(
        functools.partial(_lse_kernel, inv_temp=inv_temp, gw=gw,
                          groups=groups, use_bf16_exp=use_bf16_exp),
        out_shape=jax.ShapeDtypeStruct((n, 1), jnp.float32),
        grid_spec=pltpu.PrefetchScalarGridSpec(
            num_scalar_prefetch=0,
            grid=(n // tr, n // tc),
            in_specs=[pl.BlockSpec((tr, dp), lambda i, j: (i, 0)),
                      pl.BlockSpec((tc, dp), lambda i, j: (j, 0))],
            out_specs=pl.BlockSpec((tr, 1), lambda i, j: (i, 0)),
            scratch_shapes=[pltpu.VMEM((tr, gw), jnp.float32)],   # lane-wise sum
        ),
        compiler_params=pltpu.CompilerParams(
            dimension_semantics=("parallel", "arbitrary"), **cparams),
    )(zflat, zflat)

    # Final O(N) reductions kept in the wrapper (tiny; keeps the parallel row
    # axis free of any shared output block on v7x's two cores).
    tgt_sum = (2.0 * inv_temp) * jnp.sum(pos)
    return (jnp.sum(lse) - tgt_sum) / jnp.float32(n)


def _ntxent_ref(z_i, z_j, temperature: float):
    # Pure-JAX f32 reference (matches the PyTorch module, diagonal included).
    b = z_i.shape[0]
    z = jnp.concatenate([z_i, z_j], axis=0).astype(jnp.float32)
    n = 2 * b
    dots = jnp.matmul(z, z.T, precision=lax.Precision.HIGHEST)
    norms = jnp.linalg.norm(z, axis=-1, keepdims=True)
    sim = dots / jnp.maximum(norms * norms.T, 1e-8) / temperature
    labels = (jnp.arange(n) + b) % n
    lse = jax.scipy.special.logsumexp(sim, axis=-1)
    tgt = sim[jnp.arange(n), labels]
    return jnp.sum(lse - tgt) / n


if __name__ == "__main__":
    batch_size = 4
    dim = 32
    temperature = 0.5

    key = jax.random.PRNGKey(0)
    k1, k2 = jax.random.split(key)
    z_i = jax.random.normal(k1, (batch_size, dim), dtype=jnp.float32)
    z_j = jax.random.normal(k2, (batch_size, dim), dtype=jnp.float32)

    ref = jax.block_until_ready(_ntxent_ref(z_i, z_j, temperature))

    # f32 MXU-operand path: matches the f32 reference tightly.
    loss_f32 = jax.block_until_ready(
        ntxent_loss(z_i, z_j, temperature, use_bf16_matmul=False))
    assert jnp.allclose(loss_f32, ref, rtol=1e-5, atol=1e-5), (loss_f32, ref)

    # Default fast path: bf16 MXU operands (and bf16 exp on v6e/v7x), f32
    # accumulation / softmax math.  Only bf16 rounding (~2^-9 relative)
    # separates it from the f32 reference.
    loss_bf16 = jax.block_until_ready(ntxent_loss(z_i, z_j, temperature))
    assert jnp.allclose(loss_bf16, ref, rtol=2.5e-2, atol=2.5e-2), (loss_bf16, ref)

    print("KERNEL_OK")
</pallas_src>

<mosaic_0001>
module attributes {stable_mosaic.version = 11 : i64} {
  func.func @_prep_kernel(%arg0: i32, %arg1: memref<4x128xf32, #tpu.memory_space<vmem>>, %arg2: memref<4x128xf32, #tpu.memory_space<vmem>>, %arg3: memref<2x4x128xf32, #tpu.memory_space<vmem>>, %arg4: memref<4x1xf32, #tpu.memory_space<vmem>>) attributes {dimension_semantics = [#tpu.dimension_semantics<parallel>], iteration_bounds = array<i64: 1>, scalar_prefetch = 0 : i64, scratch_operands = 0 : i64, tpu.core_type = #tpu.core_type<tc>, window_params = [{transform_indices = @transform_0, window_bounds = array<i64: 4, 128>}, {transform_indices = @transform_1, window_bounds = array<i64: 4, 128>}, {transform_indices = @transform_2, window_bounds = array<i64: 2, 4, 128>}, {transform_indices = @transform_3, window_bounds = array<i64: 4, 1>}]} {
    %c0 = arith.constant 0 : index
    %c0_0 = arith.constant 0 : index
    %0 = vector.load %arg1[%c0, %c0_0] : memref<4x128xf32, #tpu.memory_space<vmem>>, vector<4x128xf32>
    %c0_1 = arith.constant 0 : index
    %c0_2 = arith.constant 0 : index
    %1 = vector.load %arg2[%c0_1, %c0_2] : memref<4x128xf32, #tpu.memory_space<vmem>>, vector<4x128xf32>
    %2 = arith.mulf %0, %0 : vector<4x128xf32>
    %cst = arith.constant dense<0.000000e+00> : vector<4xf32>
    %3 = vector.multi_reduction <add>, %2, %cst [1] : vector<4x128xf32> to vector<4xf32>
    %4 = vector.shape_cast %3 : vector<4xf32> to vector<4x1xf32>
    %cst_3 = arith.constant 9.99999996E-13 : f32
    %5 = vector.broadcast %cst_3 : f32 to vector<4x1xf32>
    %6 = arith.maximumf %4, %5 : vector<4x1xf32>
    %7 = math.rsqrt %6 : vector<4x1xf32>
    %8 = vector.broadcast %7 : vector<4x1xf32> to vector<4x128xf32>
    %9 = arith.mulf %0, %8 : vector<4x128xf32>
    %10 = arith.mulf %1, %1 : vector<4x128xf32>
    %cst_4 = arith.constant dense<0.000000e+00> : vector<4xf32>
    %11 = vector.multi_reduction <add>, %10, %cst_4 [1] : vector<4x128xf32> to vector<4xf32>
    %12 = vector.shape_cast %11 : vector<4xf32> to vector<4x1xf32>
    %cst_5 = arith.constant 9.99999996E-13 : f32
    %13 = vector.broadcast %cst_5 : f32 to vector<4x1xf32>
    %14 = arith.maximumf %12, %13 : vector<4x1xf32>
    %15 = math.rsqrt %14 : vector<4x1xf32>
    %16 = vector.broadcast %15 : vector<4x1xf32> to vector<4x128xf32>
    %17 = arith.mulf %1, %16 : vector<4x128xf32>
    %c0_6 = arith.constant 0 : index
    %c0_7 = arith.constant 0 : index
    %c0_8 = arith.constant 0 : index
    %18 = vector.load %arg3[%c0_6, %c0_7, %c0_8] : memref<2x4x128xf32, #tpu.memory_space<vmem>>, vector<1x4x128xf32>
    %19 = vector.shape_cast %18 : vector<1x4x128xf32> to vector<4x128xf32>
    %20 = vector.shape_cast %9 : vector<4x128xf32> to vector<1x4x128xf32>
    tpu.vector_store %arg3[%c0_6, %c0_7, %c0_8], %20 {strides = array<i32>} : memref<2x4x128xf32, #tpu.memory_space<vmem>>, vector<1x4x128xf32>,
    %c1 = arith.constant 1 : index
    %c0_9 = arith.constant 0 : index
    %c0_10 = arith.constant 0 : index
    %21 = vector.load %arg3[%c1, %c0_9, %c0_10] : memref<2x4x128xf32, #tpu.memory_space<vmem>>, vector<1x4x128xf32>
    %22 = vector.shape_cast %21 : vector<1x4x128xf32> to vector<4x128xf32>
    %23 = vector.shape_cast %17 : vector<4x128xf32> to vector<1x4x128xf32>
    tpu.vector_store %arg3[%c1, %c0_9, %c0_10], %23 {strides = array<i32>} : memref<2x4x128xf32, #tpu.memory_space<vmem>>, vector<1x4x128xf32>,
    %24 = arith.mulf %9, %17 : vector<4x128xf32>
    %cst_11 = arith.constant dense<0.000000e+00> : vector<4xf32>
    %25 = vector.multi_reduction <add>, %24, %cst_11 [1] : vector<4x128xf32> to vector<4xf32>
    %26 = vector.shape_cast %25 : vector<4xf32> to vector<4x1xf32>
    %c0_12 = arith.constant 0 : index
    %c0_13 = arith.constant 0 : index
    %27 = vector.load %arg4[%c0_12, %c0_13] : memref<4x1xf32, #tpu.memory_space<vmem>>, vector<4x1xf32>
    tpu.vector_store %arg4[%c0_12, %c0_13], %26 {strides = array<i32>} : memref<4x1xf32, #tpu.memory_space<vmem>>, vector<4x1xf32>,
    return
  }
  func.func @transform_0(%arg0: i32) -> (i32, i32) {
    %c0_i32 = arith.constant 0 : i32
    %c0_i32_0 = arith.constant 0 : i32
    return %arg0, %c0_i32 : i32, i32
  }
  func.func @transform_1(%arg0: i32) -> (i32, i32) {
    %c0_i32 = arith.constant 0 : i32
    %c0_i32_0 = arith.constant 0 : i32
    return %arg0, %c0_i32 : i32, i32
  }
  func.func @transform_2(%arg0: i32) -> (i32, i32, i32) {
    %c0_i32 = arith.constant 0 : i32
    %c0_i32_0 = arith.constant 0 : i32
    %c0_i32_1 = arith.constant 0 : i32
    return %c0_i32, %arg0, %c0_i32_0 : i32, i32, i32
  }
  func.func @transform_3(%arg0: i32) -> (i32, i32) {
    %c0_i32 = arith.constant 0 : i32
    %c0_i32_0 = arith.constant 0 : i32
    return %arg0, %c0_i32 : i32, i32
  }
}

</mosaic_0001>

<bundles_post_ra>
// kernel: tpu_custom_call.1
= control target key start
LH: loop header
LB: loop body
LE: loop exit
PB: predicated region body
PF: predicated region fallthrough
CT: control target
= control target key end

     0   :  { %9 = vsyncpa [#allocation3], 0  ;;  %s237_s0 = inlined_call_operand.hbm [shape: f32[4,128], index: 0, kind: input, shape index: {}]   ;;  %s238_s1 = inlined_call_operand.hbm [shape: f32[4,128], index: 1, kind: input, shape index: {}]   ;;  %s239_s2 = inlined_call_operand.hbm [shape: f32[2,4,128], index: 2, kind: output, shape index: {0}]   ;;  %s240_s3 = inlined_call_operand.vmem [shape: f32[4,1], index: 3, kind: output, shape index: {1}]  }
   0x1   :  { %10 = vsyncpa [#allocation6], 0 }
   0x2   :  { %11 = vsyncpa [#allocation4], 0  ;;  %s17_s14 = sshll.u32 %s237_s0, 4  ;;  %s197_s15 = smov [#allocation2]   ;;  %s18_s14 = int_to_ptr.hbm [resolvable:$true] %s17_s14 }
   0x3   :  { %s19_s16 = sshll.u32 %s197_s15, 4  ;;  %s28_s19 = sshll.u32 %s238_s1, 4  ;;  %s20_s16 = int_to_ptr.vmem [resolvable:$true] %s19_s16  ;;  %s29_s19 = int_to_ptr.hbm [resolvable:$true] %s28_s19 }
   0x4   :  { %22 = dma.hbm_to_vmem [thread:$0]  %s18_s14, 64, %s20_s16, [#allocation3]  }
   0x5   :  { %s198_s20 = smov [#allocation5]  }
   0x6   :  { %s30_s21 = sshll.u32 %s198_s20, 4  ;;  %s31_s21 = int_to_ptr.vmem [resolvable:$true] %s30_s21 }
   0x7   :  { %33 = dma.hbm_to_vmem [thread:$0]  %s29_s19, 64, %s31_s21, [#allocation6]  }
   0x8   :  { %191 = dma.done.wait [#allocation3], 64  }
   0x9   :  { %192 = vsyncadd [#allocation3], 4294967232 }
   0xa   :  { %193 = dma.done.wait [#allocation6], 64  }
   0xb   :  { %194 = vsyncadd [#allocation6], 4294967232  ;;  %v42_v0 = vld [vmem:[#allocation2] sm:$0xf]  ;;  %vm45_vm0 = vcmask 1043456   ;;  %s199_s0 = smov [#allocation7]  }
   0xc   :  { %v44_v1 = vmul.f32 %v42_v0, %v42_v0  ;;  %v43_v2 = vld [vmem:[#allocation5] sm:$0xf]  ;;  %s90_s1 = sshll.u32 %s199_s0, 4  ;;  %s92_s24 = sshll.u32 %s239_s2, 4  ;;  %vm84_vm7 = vcmask 3072   ;;  %s91_s1 = int_to_ptr.vmem [resolvable:$true] %s90_s1  ;;  %s93_s24 = int_to_ptr.hbm [resolvable:$true] %s92_s24 }
   0xd   :  { %v61_v4 = vmul.f32 %v43_v2, %v43_v2  ;;  %s200_s25 = smov 64   ;;  %s201_s26 = smov 4  }
   0xe   :  { %v46_v3 = vsel %vm45_vm0, %v44_v1, 0.0 }
   0xf   :  { %47 = vadd.xlane.f32.xlu0 %v46_v3  ;;  %v62_v5 = vsel %vm45_vm0, %v61_v4, 0.0 }
  0x17   :  { %63 = vadd.xlane.f32.xlu0 %v62_v5 }
  0x82   :  { %v48_v6 = vpop.xlane.xlu0 %47 }
  0x83   :  { %v49_v7 = vmax.f32 %v48_v6, 1e-12 }
  0x85   :  { %115 = vrsqrt.f32 %v49_v7  ;;  %vm56_vm2 = vweird.f32 %v49_v7 }
  0x8a   :  { %v64_v8 = vpop.xlane.xlu0 %63 }
  0x8b   :  { %v116_v9 = vpop.eup %115  ;;  %v65_v10 = vmax.f32 %v64_v8, 1e-12 }
  0x8c   :  { %v51_v11 = vmul.f32 %v116_v9, %v49_v7  ;;  %vm57_vm1 = vweird.f32 %v116_v9 }
  0x8d   :  { %117 = vrsqrt.f32 %v65_v10  ;;  %vm58_vm3 = vmor %vm56_vm2, %vm57_vm1  ;;  %vm72_vm5 = vweird.f32 %v65_v10 }
  0x8e   :  { %v52_v12 = vmul.f32 %v116_v9, %v51_v11 }
  0x90   :  { %v53_v13 = vmul.f32 0.5, %v52_v12 }
  0x92   :  { %v54_v14 = vsub.f32 1.5, %v53_v13 }
  0x93   :  { %v118_v15 = vpop.eup %117 }
  0x94   :  { %v67_v16 = vmul.f32 %v118_v15, %v65_v10  ;;  %v55_v17 = vmul.f32 %v116_v9, %v54_v14  ;;  %vm73_vm4 = vweird.f32 %v118_v15 }
  0x95   :  { %vm74_vm6 = vmor %vm72_vm5, %vm73_vm4 }
  0x96   :  { %v68_v18 = vmul.f32 %v118_v15, %v67_v16  ;;  %v59_v19 = vsel %vm58_vm3, %v116_v9, %v55_v17 }
  0x97   :  { %v60_v20 = vmul.f32 %v59_v19, %v42_v0 }
  0x98   :  { %v69_v21 = vmul.f32 0.5, %v68_v18 }
  0x99   :  { %77 = vst [vmem:[#allocation7] sm:$0xf] %v60_v20 }
  0x9a   :  { %v70_v22 = vsub.f32 1.5, %v69_v21 }
  0x9c   :  { %v71_v23 = vmul.f32 %v118_v15, %v70_v22 }
  0x9e   :  { %v75_v24 = vsel %vm74_vm6, %v118_v15, %v71_v23 }
  0x9f   :  { %v76_v25 = vmul.f32 %v75_v24, %v43_v2 }
  0xa1   :  { %v80_v26 = vmul.f32 %v76_v25, %v60_v20  ;;  %79 = vst [vmem:[#allocation7 + $0x4] sm:$0xf] %v76_v25 }
  0xa2   :  { %98 = dma.vmem_to_hbm [thread:$0]  %s91_s1, 128, %s93_s24, [#allocation4], %s200_s25, %s200_s25, %s201_s26  }
  0xa3   :  { %v81_v27 = vsel %vm45_vm0, %v80_v26, 0.0 }
  0xa4   :  { %82 = vadd.xlane.f32.xlu1 %v81_v27 }
 0x117   :  { %v83_v28 = vpop.xlane.xlu1 %82 }
 0x118   :  { %85 = vst.msk [vmem:[%s240_s3] sm:$0xf] %vm84_vm7, %v83_v28 }
 0x119   :  { %195 = dma.done.wait [#allocation4], 128  }
 0x11a   :  { %196 = vsyncadd [#allocation4], 4294967168 }
 0x11b   :  { %107 = vsyncpa [#allocation3], 1 }
 0x11c   :  { %108 = vsyncpa [#allocation6], 1 }
 0x11d   :  { %109 = vsyncpa [#allocation4], 1 }

</bundles_post_ra>
